<compile_context>
chip_gen: v7x
topology: tpu7x:2x2x1
jax: 0.10.0
libtpu: 0.0.40
codegen_flags: <defaults>
</compile_context>

<pallas_src>
import jax
import jax.numpy as jnp
from jax.experimental import pallas as pl
from jax.experimental.pallas import tpu as pltpu


# -----------------------------------------------------------------------------
# Forward: identity (exact semantics of RBM2.forward) — no kernel needed.
# -----------------------------------------------------------------------------
def rbm2_forward(x):
    return x


# -----------------------------------------------------------------------------
# Energy kernel (positive + negative phase in one call, two outputs).
#
#   E(v,h) = -v@a - h@b - sum((v@W) * h, axis=1, keepdims=True)
#
# Inputs (all VMEM, full-array blocks; D is the lane axis):
#   zeta_ref, hid_ref : (N, D)   positive phase
#   pv_ref,   ph_ref  : (P, D)   negative (persistent) phase
#   a_ref,    b_ref   : (1, D)   biases as lane-dense row vectors
#   w_ref             : (D, D)
# Outputs:
#   e_pos_ref : (N, 1)
#   e_neg_ref : (P, 1)
# -----------------------------------------------------------------------------
def _energy_kernel(zeta_ref, hid_ref, pv_ref, ph_ref, a_ref, b_ref, w_ref,
                   e_pos_ref, e_neg_ref):
    a_row = a_ref[...]                                   # (1, D)
    b_row = b_ref[...]                                   # (1, D)
    W = w_ref[...]                                       # (D, D)

    # Positive phase: one MXU push + VPU bias/cross terms + one lane reduce.
    v_p = zeta_ref[...]                                  # (N, D)
    h_p = hid_ref[...]
    vW_p = jnp.dot(v_p, W, preferred_element_type=jnp.float32)
    e_pos_ref[...] = -jnp.sum(v_p * a_row + h_p * b_row + vW_p * h_p,
                              axis=1, keepdims=True)     # (N, 1)

    # Negative (persistent) phase.
    v_n = pv_ref[...]                                    # (P, D)
    h_n = ph_ref[...]
    vW_n = jnp.dot(v_n, W, preferred_element_type=jnp.float32)
    e_neg_ref[...] = -jnp.sum(v_n * a_row + h_n * b_row + vW_n * h_n,
                              axis=1, keepdims=True)     # (P, 1)


def rbm2_energy_log_prob(zeta, hidden, pers_visible, pers_hidden, a, b, W):
    """Returns (energy_pos (N,1), energy_neg (P,1), log_p_z (N,))."""
    n_pos, d = zeta.shape
    n_neg = pers_visible.shape[0]

    # Biases as (1, D) lane-dense rows (a (D,1) column would be lane-sparse).
    a_row = jnp.reshape(a, (1, d))
    b_row = jnp.reshape(b, (1, d))

    cost = pl.CostEstimate(
        flops=2 * (n_pos + n_neg) * d * d + 8 * (n_pos + n_neg) * d,
        transcendentals=0,
        bytes_accessed=4 * (2 * (n_pos + n_neg) * d + d * d + 2 * d
                            + (n_pos + n_neg)),
    )

    vmem = pl.BlockSpec(memory_space=pltpu.MemorySpace.VMEM)
    e_pos, e_neg = pl.pallas_call(
        _energy_kernel,
        out_shape=(
            jax.ShapeDtypeStruct((n_pos, 1), jnp.float32),
            jax.ShapeDtypeStruct((n_neg, 1), jnp.float32),
        ),
        in_specs=[vmem] * 7,
        out_specs=(vmem, vmem),
        cost_estimate=cost,
    )(zeta, hidden, pers_visible, pers_hidden, a_row, b_row, W)

    # torch: log_p_z = -(mean(E_pos, dim=-1) - mean(E_neg)); E_pos is (N,1) so
    # the per-row mean is just the value. 8-scalar mean is free in the wrapper.
    log_p_z = -(e_pos[:, 0] - jnp.mean(e_neg))           # (N,)
    return e_pos, e_neg, log_p_z


# TODO(synk): update_samples() / gibbs_sample() use host-side RNG state
# (np.random.binomial, random.choices) and a mutable SR buffer, and log_prob's
# training_mode branch does host-side logging / np.savez; not part of
# forward(), left unimplemented.


if __name__ == "__main__":
    # Shapes consistent with the module:
    #   latent_dim=32, batch_size=2 -> zeta/hidden (4, 32)
    #   num_fantasy_particles=8     -> persistent states (8, 32)
    latent_dim = 32
    batch_size = 2
    num_fantasy_particles = 8

    key = jax.random.PRNGKey(0)
    k = jax.random.split(key, 7)
    zeta = jax.random.normal(k[0], (batch_size * 2, latent_dim), jnp.float32)
    hidden = (jax.random.uniform(k[1], (batch_size * 2, latent_dim)) < 0.5).astype(jnp.float32)
    pv = (jax.random.uniform(k[2], (num_fantasy_particles, latent_dim)) < 0.5).astype(jnp.float32)
    ph = (jax.random.uniform(k[3], (num_fantasy_particles, latent_dim)) < 0.5).astype(jnp.float32)
    # Module __init__ zero-initializes a, b, W; use small random values instead
    # so the kernel exercises non-trivial compute.
    a = 0.01 * jax.random.normal(k[4], (latent_dim, 1), jnp.float32)
    b = 0.01 * jax.random.normal(k[5], (latent_dim, 1), jnp.float32)
    W = 0.01 * jax.random.normal(k[6], (latent_dim, latent_dim), jnp.float32)

    # Forward pass (identity — no kernel).
    y = rbm2_forward(zeta)
    assert jnp.allclose(y, zeta)

    # Energy hot path: ONE pallas_call, two outputs; log_p_z in the wrapper.
    e_pos, e_neg, logp = rbm2_energy_log_prob(zeta, hidden, pv, ph, a, b, W)
    e_pos = jax.block_until_ready(e_pos)
    e_neg = jax.block_until_ready(e_neg)
    logp = jax.block_until_ready(logp)

    # Pure-JAX reference check (torch column-vector convention for a, b).
    def energy_ref(v, h):
        return -(v @ a) - (h @ b) - jnp.sum((v @ W) * h, axis=1, keepdims=True)

    e_pos_ref = energy_ref(zeta, hidden)
    e_neg_ref = energy_ref(pv, ph)
    logp_ref = -(jnp.mean(e_pos_ref, axis=-1) - jnp.mean(e_neg_ref))

    assert e_pos.shape == (batch_size * 2, 1)
    assert e_neg.shape == (num_fantasy_particles, 1)
    assert logp.shape == (batch_size * 2,)
    assert jnp.allclose(e_pos, e_pos_ref, atol=1e-5, rtol=1e-5)
    assert jnp.allclose(e_neg, e_neg_ref, atol=1e-5, rtol=1e-5)
    assert jnp.allclose(logp, logp_ref, atol=1e-5, rtol=1e-5)

    print("KERNEL_OK")
</pallas_src>

<mosaic_0001>
module attributes {stable_mosaic.version = 11 : i64} {
  func.func @_energy_kernel(%arg0: memref<4x32xf32, #tpu.memory_space<vmem>>, %arg1: memref<4x32xf32, #tpu.memory_space<vmem>>, %arg2: memref<8x32xf32, #tpu.memory_space<vmem>>, %arg3: memref<8x32xf32, #tpu.memory_space<vmem>>, %arg4: memref<1x32xf32, #tpu.memory_space<vmem>>, %arg5: memref<1x32xf32, #tpu.memory_space<vmem>>, %arg6: memref<32x32xf32, #tpu.memory_space<vmem>>, %arg7: memref<4x1xf32, #tpu.memory_space<vmem>>, %arg8: memref<8x1xf32, #tpu.memory_space<vmem>>) attributes {dimension_semantics = [], scalar_prefetch = 0 : i64, scratch_operands = 0 : i64, tpu.core_type = #tpu.core_type<tc>} {
    %c0 = arith.constant 0 : index
    %c0_0 = arith.constant 0 : index
    %0 = vector.load %arg4[%c0, %c0_0] : memref<1x32xf32, #tpu.memory_space<vmem>>, vector<1x32xf32>
    %c0_1 = arith.constant 0 : index
    %c0_2 = arith.constant 0 : index
    %1 = vector.load %arg5[%c0_1, %c0_2] : memref<1x32xf32, #tpu.memory_space<vmem>>, vector<1x32xf32>
    %c0_3 = arith.constant 0 : index
    %c0_4 = arith.constant 0 : index
    %2 = vector.load %arg6[%c0_3, %c0_4] : memref<32x32xf32, #tpu.memory_space<vmem>>, vector<32x32xf32>
    %c0_5 = arith.constant 0 : index
    %c0_6 = arith.constant 0 : index
    %3 = vector.load %arg0[%c0_5, %c0_6] : memref<4x32xf32, #tpu.memory_space<vmem>>, vector<4x32xf32>
    %c0_7 = arith.constant 0 : index
    %c0_8 = arith.constant 0 : index
    %4 = vector.load %arg1[%c0_7, %c0_8] : memref<4x32xf32, #tpu.memory_space<vmem>>, vector<4x32xf32>
    %cst = arith.constant dense<0.000000e+00> : vector<4x32xf32>
    %5 = tpu.matmul %3, %2, %cst {dimension_numbers = #tpu.dot_dimension_numbers<[1], [0], [0], [1], [0, 0, 1, 1], [], []>} : vector<4x32xf32>, vector<32x32xf32>, vector<4x32xf32> -> vector<4x32xf32>
    %6 = vector.broadcast %0 : vector<1x32xf32> to vector<4x32xf32>
    %7 = arith.mulf %3, %6 : vector<4x32xf32>
    %8 = vector.broadcast %1 : vector<1x32xf32> to vector<4x32xf32>
    %9 = arith.mulf %4, %8 : vector<4x32xf32>
    %10 = arith.addf %7, %9 : vector<4x32xf32>
    %11 = arith.mulf %5, %4 : vector<4x32xf32>
    %12 = arith.addf %10, %11 : vector<4x32xf32>
    %cst_9 = arith.constant dense<0.000000e+00> : vector<4xf32>
    %13 = vector.multi_reduction <add>, %12, %cst_9 [1] : vector<4x32xf32> to vector<4xf32>
    %14 = vector.shape_cast %13 : vector<4xf32> to vector<4x1xf32>
    %cst_10 = arith.constant 0.000000e+00 : f32
    %15 = vector.broadcast %cst_10 : f32 to vector<4x1xf32>
    %16 = arith.subf %15, %14 : vector<4x1xf32>
    %c0_11 = arith.constant 0 : index
    %c0_12 = arith.constant 0 : index
    %17 = vector.load %arg7[%c0_11, %c0_12] : memref<4x1xf32, #tpu.memory_space<vmem>>, vector<4x1xf32>
    tpu.vector_store %arg7[%c0_11, %c0_12], %16 {strides = array<i32>} : memref<4x1xf32, #tpu.memory_space<vmem>>, vector<4x1xf32>,
    %c0_13 = arith.constant 0 : index
    %c0_14 = arith.constant 0 : index
    %18 = vector.load %arg2[%c0_13, %c0_14] : memref<8x32xf32, #tpu.memory_space<vmem>>, vector<8x32xf32>
    %c0_15 = arith.constant 0 : index
    %c0_16 = arith.constant 0 : index
    %19 = vector.load %arg3[%c0_15, %c0_16] : memref<8x32xf32, #tpu.memory_space<vmem>>, vector<8x32xf32>
    %cst_17 = arith.constant dense<0.000000e+00> : vector<8x32xf32>
    %20 = tpu.matmul %18, %2, %cst_17 {dimension_numbers = #tpu.dot_dimension_numbers<[1], [0], [0], [1], [0, 0, 1, 1], [], []>} : vector<8x32xf32>, vector<32x32xf32>, vector<8x32xf32> -> vector<8x32xf32>
    %21 = vector.broadcast %0 : vector<1x32xf32> to vector<8x32xf32>
    %22 = arith.mulf %18, %21 : vector<8x32xf32>
    %23 = vector.broadcast %1 : vector<1x32xf32> to vector<8x32xf32>
    %24 = arith.mulf %19, %23 : vector<8x32xf32>
    %25 = arith.addf %22, %24 : vector<8x32xf32>
    %26 = arith.mulf %20, %19 : vector<8x32xf32>
    %27 = arith.addf %25, %26 : vector<8x32xf32>
    %cst_18 = arith.constant dense<0.000000e+00> : vector<8xf32>
    %28 = vector.multi_reduction <add>, %27, %cst_18 [1] : vector<8x32xf32> to vector<8xf32>
    %29 = vector.shape_cast %28 : vector<8xf32> to vector<8x1xf32>
    %cst_19 = arith.constant 0.000000e+00 : f32
    %30 = vector.broadcast %cst_19 : f32 to vector<8x1xf32>
    %31 = arith.subf %30, %29 : vector<8x1xf32>
    %c0_20 = arith.constant 0 : index
    %c0_21 = arith.constant 0 : index
    %32 = vector.load %arg8[%c0_20, %c0_21] : memref<8x1xf32, #tpu.memory_space<vmem>>, vector<8x1xf32>
    tpu.vector_store %arg8[%c0_20, %c0_21], %31 {strides = array<i32>} : memref<8x1xf32, #tpu.memory_space<vmem>>, vector<8x1xf32>,
    return
  }
}

</mosaic_0001>

<bundles_post_ra>
// kernel: tpu_custom_call.1
= control target key start
LH: loop header
LB: loop body
LE: loop exit
PB: predicated region body
PF: predicated region fallthrough
CT: control target
= control target key end

     0   :  { %14 = vsyncpa [#allocation3], 0  ;;  %s558_s0 = inlined_call_operand.hbm [shape: f32[4,32], index: 0, kind: input, shape index: {}]   ;;  %s559_s1 = inlined_call_operand.hbm [shape: f32[4,32], index: 1, kind: input, shape index: {}]   ;;  %s560_s2 = inlined_call_operand.hbm [shape: f32[8,32], index: 2, kind: input, shape index: {}]   ;;  %s561_s3 = inlined_call_operand.vmem [shape: f32[8,32], index: 3, kind: input, shape index: {}]   ;;  %s562_s4 = inlined_call_operand.vmem [shape: f32[1,32], index: 4, kind: input, shape index: {}]   ;;  %s563_s5 = inlined_call_operand.vmem [shape: f32[1,32], index: 5, kind: input, shape index: {}]   ;;  %s564_s6 = inlined_call_operand.hbm [shape: f32[32,32], index: 6, kind: input, shape index: {}]   ;;  %s565_s7 = inlined_call_operand.vmem [shape: f32[4,1], index: 7, kind: output, shape index: {0}]   ;;  %s566_s8 = inlined_call_operand.vmem [shape: f32[8,1], index: 8, kind: output, shape index: {1}]  }
   0x1   :  { %15 = vsyncpa [#allocation5], 0 }
   0x2   :  { %16 = vsyncpa [#allocation8], 0  ;;  %s431_s27 = smov [#allocation4]   ;;  %s432_s29 = smov [#allocation2]  }
   0x3   :  { %s33_s28 = sshll.u32 %s431_s27, 4  ;;  %s23_s30 = sshll.u32 %s432_s29, 4  ;;  %s34_s28 = int_to_ptr.vmem [resolvable:$true] %s33_s28  ;;  %s24_s30 = int_to_ptr.vmem [resolvable:$true] %s23_s30 }
   0x4   :  { %s337_s11 = scalar_lea.hbm %s559_s1, 64 }
   0x5   :  { %p338_p0 = scmp.ne.s32.totalorder %s559_s1, %s337_s11  ;;  %p341_p1 = scmp.lt.u32.totalorder %s337_s11, %s559_s1 }
   0x7   :  { %p343_p2 = pnand %p341_p1, %p338_p0 }
   0x9   :  { %346 = shalt.err (!%p343_p2)
}
   0xa   :  { %s347_s16 = scalar_lea.vmem %s34_s28, 64  ;;  %p352_p4 = scmp.lt.s32.totalorder %s34_s28, %s34_s28 }
   0xb   :  { %p348_p3 = scmp.ne.s32.totalorder %s34_s28, %s347_s16  ;;  %p353_p5 = scmp.lt.s32.totalorder %s347_s16, %s347_s16 }
   0xd   :  { %p354_p6 = por %p353_p5, %p352_p4 }
   0xf   :  { %p355_p7 = pnand %p354_p6, %p348_p3 }
  0x11   :  { %358 = shalt.err (!%p355_p7)
}
  0x12   :  { %36 = dma.hbm_to_vmem [thread:$0]  %s559_s1, 64, %s34_s28, [#allocation5]  }
  0x13   :  { %s359_s21 = scalar_lea.hbm %s558_s0, 64 }
  0x14   :  { %p360_p8 = scmp.ne.s32.totalorder %s558_s0, %s359_s21  ;;  %p363_p9 = scmp.lt.u32.totalorder %s359_s21, %s558_s0 }
  0x16   :  { %p365_p10 = pnand %p363_p9, %p360_p8 }
  0x18   :  { %368 = shalt.err (!%p365_p10)
}
  0x19   :  { %s369_s26 = scalar_lea.vmem %s24_s30, 64  ;;  %p374_p12 = scmp.lt.s32.totalorder %s24_s30, %s24_s30 }
  0x1a   :  { %p370_p11 = scmp.ne.s32.totalorder %s24_s30, %s369_s26  ;;  %p375_p13 = scmp.lt.s32.totalorder %s369_s26, %s369_s26 }
  0x1c   :  { %p376_p0 = por %p375_p13, %p374_p12 }
  0x1e   :  { %p377_p1 = pnand %p376_p0, %p370_p11 }
  0x20   :  { %380 = shalt.err (!%p377_p1)
}
  0x21   :  { %26 = dma.hbm_to_vmem [thread:$0]  %s558_s0, 64, %s24_s30, [#allocation3]  }
  0x22   :  { %s433_s28 = smov [#allocation6]   ;;  %s434_s9 = smov [#allocation7]  }
  0x23   :  { %s43_s29 = sshll.u32 %s433_s28, 4  ;;  %s58_s10 = sshll.u32 %s434_s9, 4  ;;  %s44_s29 = int_to_ptr.vmem [resolvable:$true] %s43_s29  ;;  %s509_s10 = int_to_ptr.vmem [resolvable:$true] %s58_s10 }
  0x24   :  { %s381_s13 = scalar_lea.hbm %s560_s2, 128 }
  0x25   :  { %p382_p2 = scmp.ne.s32.totalorder %s560_s2, %s381_s13  ;;  %p385_p3 = scmp.lt.u32.totalorder %s381_s13, %s560_s2 }
  0x27   :  { %p387_p4 = pnand %p385_p3, %p382_p2 }
  0x29   :  { %390 = shalt.err (!%p387_p4)
}
  0x2a   :  { %s391_s0 = scalar_lea.vmem %s44_s29, 128  ;;  %p396_p6 = scmp.lt.s32.totalorder %s44_s29, %s44_s29 }
  0x2b   :  { %p392_p5 = scmp.ne.s32.totalorder %s44_s29, %s391_s0  ;;  %p397_p7 = scmp.lt.s32.totalorder %s391_s0, %s391_s0 }
  0x2d   :  { %p398_p8 = por %p397_p7, %p396_p6 }
  0x2f   :  { %p399_p9 = pnand %p398_p8, %p392_p5 }
  0x31   :  { %402 = shalt.err (!%p399_p9)
}
  0x32   :  { %46 = dma.hbm_to_vmem [thread:$0]  %s560_s2, 128, %s44_s29, [#allocation5]  }
  0x33   :  { %s403_s21 = scalar_lea.hbm %s564_s6, 512 }
  0x34   :  { %p404_p10 = scmp.ne.s32.totalorder %s564_s6, %s403_s21  ;;  %p407_p11 = scmp.lt.u32.totalorder %s403_s21, %s564_s6 }
  0x36   :  { %p409_p12 = pnand %p407_p11, %p404_p10 }
  0x38   :  { %412 = shalt.err (!%p409_p12)
}
  0x39   :  { %s413_s26 = scalar_lea.vmem %s509_s10, 512  ;;  %p418_p0 = scmp.lt.s32.totalorder %s509_s10, %s509_s10 }
  0x3a   :  { %p414_p13 = scmp.ne.s32.totalorder %s509_s10, %s413_s26  ;;  %p419_p1 = scmp.lt.s32.totalorder %s413_s26, %s413_s26 }
  0x3c   :  { %p420_p2 = por %p419_p1, %p418_p0 }
  0x3e   :  { %p421_p3 = pnand %p420_p2, %p414_p13 }
  0x40   :  { %424 = shalt.err (!%p421_p3)
}
  0x41   :  { %s435_s2 = smov 128   ;;  %s436_s1 = smov 8  }
  0x42   :  { %64 = dma.hbm_to_vmem [thread:$0]  %s564_s6, 512, %s509_s10, [#allocation8], %s435_s2, %s435_s2, %s436_s1  }
  0x43   :  { %425 = dma.done.wait [#allocation3], 64  }
  0x44   :  { %426 = vsyncadd [#allocation3], 4294967232 }
  0x45   :  { %427 = dma.done.wait [#allocation5], 192  }
  0x46   :  { %428 = vsyncadd [#allocation5], 4294967104 }
  0x47   :  { %429 = dma.done.wait [#allocation8], 512  }
  0x48   :  { %430 = vsyncadd [#allocation8], 4294966784  ;;  %v437_v0 = vmov 0.0|0.0   ;;  %vm438_vm0 = vmmov 0   ;;  %v439_v1 = vmov 0.0   ;;  %v79_v2 = vld [vmem:[#allocation7] sm:$0xff] }
  0x49   :  { %316 = vmatprep.subr.bf16.mxu0 %v437_v0  ;;  %322 = vmatprep.subr.bf16.mxu1 %v437_v0  ;;  %v80_v3 = vld [vmem:[#allocation7 + $0x8] sm:$0xff]  ;;  %v81_v4 = vld [vmem:[#allocation7 + $0x10] sm:$0xff]  ;;  %v82_v6 = vld [vmem:[#allocation7 + $0x18] sm:$0xff]  ;;  %vm85_vm1 = vcmask 261120   ;;  %vm176_vm2 = vcmask 257024   ;;  %vm181_vm3 = vcmask 3072  }
  0x4a   :  { %302 = vmatprep.mubr.msk.f32.mxu0 %vm438_vm0, %v439_v1  ;;  %313 = vmatprep.mubr.msk.f32.mxu1 %vm438_vm0, %v439_v1  ;;  %v317_v5 = vpack.c.bf16 %v80_v3, %v79_v2  ;;  %v320_v7 = vpack.c.bf16 %v82_v6, %v81_v4  ;;  %v83_v8 = vld [vmem:[#allocation2] sm:$0xf]  ;;  %v183_v9 = vld [vmem:[#allocation6] sm:$0xff]  ;;  %v84_v12 = vld [vmem:[#allocation4] sm:$0xf]  ;;  %vm267_vm4 = vcmask 7168  }
  0x4b   :  { %v281_v10 = vld [vmem:[%s562_s4] ss:$0 sm:$0xff] }
  0x4c   :  { %318 = vmatpush3.bf16.msra.mxu0 %v317_v5  ;;  %324 = vmatpush3.bf16.msra.mxu1 %v317_v5  ;;  %v282_v11 = vld [vmem:[%s563_s5] ss:$0 sm:$0xff]  ;;  %v165_v14 = vmul.f32 %v281_v10, %v83_v8  ;;  %v258_v15 = vmul.f32 %v281_v10, %v183_v9 }
  0x4d   :  { %319 = vmatprep.subr.bf16.mxu0 %v437_v0  ;;  %325 = vmatprep.subr.bf16.mxu1 %v437_v0  ;;  %v184_v13 = vld [vmem:[%s561_s3] sm:$0xff]  ;;  %v172_v16 = vmul.f32 %v282_v11, %v84_v12 }
  0x4e   :  { %v259_v17 = vmul.f32 %v282_v11, %v184_v13 }
  0x4f   :  { %v173_v18 = vadd.f32 %v172_v16, %v165_v14 }
  0x50   :  { %321 = vmatpush3.bf16.msra.mxu0 %v320_v7  ;;  %327 = vmatpush3.bf16.msra.mxu1 %v320_v7  ;;  %v260_v19 = vadd.f32 %v259_v17, %v258_v15 }
  0x53   :  { %303 = vmatmul.mubr.msk.f32.vlgmr.msra.gmra.mrb[0].mxu0 %vm85_vm1, %v83_v8  ;;  %314 = vmatmul.mubr.msk.f32.vlgmr.msra.gmra.mrb[0].mxu1 %vm85_vm1, %v183_v9 }
 0x126   :  { %v155_v20 = vpop.f32.mrb[0].mxu0  ;;  %v254_v21 = vpop.f32.mrb[0].mxu1 }
 0x127   :  { %v174_v22 = vmul.f32 %v155_v20, %v84_v12  ;;  %v304_v23 = vpop.f32.mrb[1].mxu0  ;;  %v261_v24 = vmul.f32 %v254_v21, %v184_v13  ;;  %v315_v25 = vpop.f32.mrb[1].mxu1 }
 0x129   :  { %v175_v26 = vadd.f32 %v174_v22, %v173_v18  ;;  %v262_v27 = vadd.f32 %v261_v24, %v260_v19 }
 0x12b   :  { %v177_v28 = vsel %vm176_vm2, %v175_v26, 0.0  ;;  %v263_v29 = vsel %vm85_vm1, %v262_v27, 0.0 }
 0x12c   :  { %178 = vadd.xlane.f32.xlu0 %v177_v28 }
 0x130   :  { %264 = vadd.xlane.f32.xlu0 %v263_v29 }
 0x1b9   :  { %v179_v30 = vpop.xlane.xlu0 %178 }
 0x1ba   :  { %v180_v31 = vsub.f32 0.0, %v179_v30 }
 0x1bc   :  { %182 = vst.msk [vmem:[%s565_s7] sm:$0xf] %vm181_vm3, %v180_v31 }
 0x1bd   :  { %v265_v32 = vpop.xlane.xlu0 %264 }
 0x1be   :  { %v266_v33 = vsub.f32 0.0, %v265_v32 }
 0x1c0   :  { %268 = vst.msk [vmem:[%s566_s8] sm:$0xff] %vm267_vm4, %v266_v33 }
 0x1c1   :  { %277 = vsyncpa [#allocation3], 1 }
 0x1c2   :  { %278 = vsyncpa [#allocation5], 1 }
 0x1c3   :  { %279 = vsyncpa [#allocation8], 1 }

</bundles_post_ra>
